<compile_context>
chip_gen: v5e
topology: v5e:2x2
jax: 0.10.0
libtpu: 0.0.40
codegen_flags: <defaults>
</compile_context>

<pallas_src>
import functools

import jax
import jax.numpy as jnp
from jax.experimental import pallas as pl
from jax.experimental.pallas import tpu as pltpu

BN_EPS = 1e-5


def _mix32(x):
    """splitmix32-style finalizer on uint32 (good avalanche on counters)."""
    x = x ^ (x >> 16)
    x = x * jnp.uint32(0x7FEB352D)
    x = x ^ (x >> 15)
    x = x * jnp.uint32(0x846CA68B)
    x = x ^ (x >> 16)
    return x


def mlp_kernel(seed_ref, x_ref, w_ref, gamma_ref, beta_ref, o_ref, acc_ref,
               *, dropout_p, tn, d_out_padded):
    # Hoist every pallas-specific scalar out of the pl.when bodies (program_id
    # inside a cond branch is not supported by the interpret fallback).
    j = pl.program_id(0)
    k = pl.program_id(1)
    nk = pl.num_programs(1)
    col_base = j * tn
    seed_u = seed_ref[0].astype(jnp.uint32)

    @pl.when(k == 0)
    def _():
        acc_ref[...] = jnp.zeros_like(acc_ref)

    # Linear (bias omitted: it cancels exactly under training-mode BatchNorm).
    # bf16 operands on the MXU, f32 accumulation in VMEM scratch.
    acc_ref[...] += jnp.dot(x_ref[...], w_ref[...],
                            preferred_element_type=jnp.float32)

    @pl.when(k == nk - 1)
    def _():
        y = acc_ref[...]                                    # (N, tn) f32

        # BatchNorm1d (training mode): biased batch mean/var per feature,
        # fused with the affine (gamma, beta) into one scale/shift.
        mean = jnp.mean(y, axis=0, keepdims=True)
        var = jnp.mean((y - mean) ** 2, axis=0, keepdims=True)
        inv_std = jax.lax.rsqrt(var + BN_EPS)
        scale = gamma_ref[...] * inv_std                    # (1, tn)
        shift = beta_ref[...] - mean * scale
        if dropout_p > 0.0:
            # Fold the dropout 1/(1-p) scaling in as well (ReLU is
            # positively homogeneous, so this commutes with the ReLU below).
            inv_keep = 1.0 / (1.0 - dropout_p)
            scale = scale * inv_keep
            shift = shift * inv_keep

        y = jnp.maximum(y * scale + shift, 0.0)             # BN affine + ReLU

        if dropout_p > 0.0:
            # Dropout via a counter-based hash PRNG: one uint32 per output
            # element, keyed by the global element id + seed, so the mask is
            # unique per tile and independent of the tiling.
            # TODO(synk): statistically equivalent to torch.nn.Dropout but not
            # bit-identical to torch's RNG stream.
            row = jax.lax.broadcasted_iota(jnp.int32, y.shape, 0)
            col = col_base + jax.lax.broadcasted_iota(jnp.int32, y.shape, 1)
            ctr = (row * d_out_padded + col).astype(jnp.uint32)
            bits = _mix32(ctr + seed_u * jnp.uint32(0x9E3779B1))
            # keep iff bits >= p * 2^32  ->  P(keep) = 1 - p
            thr = jnp.uint32(min(int(round(dropout_p * 4294967296.0)),
                                 4294967295))
            y = jnp.where(bits >= thr, y, 0.0)

        o_ref[...] = y.astype(o_ref.dtype)


def mlp_forward(x, w, b, gamma, beta, seed, dropout_p, *, tn=128, tk=128):
    """x: (N, D_in); w: (D_in, D_out); b/gamma/beta: (1, D_out); seed: (1,) i32.

    `b` is accepted for API parity with nn.Linear(bias=True) but is unused:
    training-mode BatchNorm subtracts the batch mean, so the bias cancels
    exactly (fold any desired shift into `beta`).
    """
    del b
    n, d_in = x.shape
    d_out = w.shape[1]
    out_dtype = x.dtype

    # Pad the contraction dim and D_out up to 128-aligned tiles (lane-dense
    # stores).  The batch dim is never tiled or padded -> exact BN statistics.
    k_pad = (-d_in) % tk
    j_pad = (-d_out) % tn
    xb = x.astype(jnp.bfloat16)
    wb = w.astype(jnp.bfloat16)
    g = gamma.astype(jnp.float32)
    bt = beta.astype(jnp.float32)
    if k_pad:
        xb = jnp.pad(xb, ((0, 0), (0, k_pad)))
        wb = jnp.pad(wb, ((0, k_pad), (0, 0)))
    if j_pad:
        wb = jnp.pad(wb, ((0, 0), (0, j_pad)))
        g = jnp.pad(g, ((0, 0), (0, j_pad)))
        bt = jnp.pad(bt, ((0, 0), (0, j_pad)))
    d_in_p, d_out_p = d_in + k_pad, d_out + j_pad

    kernel = functools.partial(mlp_kernel, dropout_p=float(dropout_p),
                               tn=tn, d_out_padded=d_out_p)

    out_bytes = n * d_out_p * jnp.dtype(out_dtype).itemsize
    grid = (d_out_p // tn, d_in_p // tk)     # (feature tiles, K tiles); K last

    out = pl.pallas_call(
        kernel,
        out_shape=jax.ShapeDtypeStruct((n, d_out_p), out_dtype),
        grid_spec=pltpu.PrefetchScalarGridSpec(
            num_scalar_prefetch=1,           # dropout seed -> SMEM
            grid=grid,
            in_specs=[
                pl.BlockSpec((n, tk), lambda j, k, s: (0, k)),    # x
                pl.BlockSpec((tk, tn), lambda j, k, s: (k, j)),   # w
                pl.BlockSpec((1, tn), lambda j, k, s: (0, j)),    # gamma
                pl.BlockSpec((1, tn), lambda j, k, s: (0, j)),    # beta
            ],
            out_specs=pl.BlockSpec((n, tn), lambda j, k, s: (0, j)),
            scratch_shapes=[pltpu.VMEM((n, tn), jnp.float32)],    # f32 acc
        ),
        compiler_params=pltpu.CompilerParams(
            dimension_semantics=("parallel", "arbitrary"),
            vmem_limit_bytes=64 * 1024 * 1024,
        ),
        cost_estimate=pl.CostEstimate(
            flops=2 * n * d_in_p * d_out_p,
            transcendentals=d_out_p,
            bytes_accessed=int(xb.size * 2 + wb.size * 2
                               + g.size * 4 + bt.size * 4 + out_bytes),
        ),
    )(seed, xb, wb, g, bt)

    return out[:, :d_out] if j_pad else out


if __name__ == "__main__":
    # Small but lane-dense shapes (D_in, D_out multiples of 128).
    batch, input_dim, output_dim = 64, 256, 256
    dropout_p = 0.5

    key = jax.random.PRNGKey(0)
    kx, kw, kb = jax.random.split(key, 3)

    x = jax.random.normal(kx, (batch, input_dim), dtype=jnp.float32)

    # Deterministic synthetic parameters (torch nn.Linear weight is
    # (D_out, D_in); we store it pre-transposed as (D_in, D_out)).
    bound = 1.0 / (input_dim ** 0.5)
    w = jax.random.uniform(kw, (input_dim, output_dim), jnp.float32, -bound, bound)
    b = jax.random.uniform(kb, (1, output_dim), jnp.float32, -bound, bound)
    gamma = jnp.ones((1, output_dim), jnp.float32)   # BatchNorm1d weight init
    beta = jnp.zeros((1, output_dim), jnp.float32)   # BatchNorm1d bias init
    seed = jnp.array([0], dtype=jnp.int32)

    # --- correctness check vs. a pure-JAX reference with dropout disabled ---
    out0 = mlp_forward(x, w, b, gamma, beta, seed, 0.0)
    jax.block_until_ready(out0)
    xr = x.astype(jnp.bfloat16).astype(jnp.float32)
    wr = w.astype(jnp.bfloat16).astype(jnp.float32)
    y = jnp.dot(xr, wr, precision=jax.lax.Precision.HIGHEST) + b
    mean = jnp.mean(y, axis=0, keepdims=True)
    var = jnp.mean((y - mean) ** 2, axis=0, keepdims=True)
    ref = jnp.maximum((y - mean) * jax.lax.rsqrt(var + BN_EPS) * gamma + beta, 0.0)
    assert out0.shape == ref.shape
    assert bool(jnp.allclose(out0, ref, rtol=1e-2, atol=1e-2)), (
        "max abs err: %g" % float(jnp.max(jnp.abs(out0 - ref))))

    # --- training-mode forward with dropout enabled ---
    out = mlp_forward(x, w, b, gamma, beta, seed, dropout_p)
    jax.block_until_ready(out)
    assert out.shape == (batch, output_dim)
    assert bool(jnp.all(jnp.isfinite(out)))
    print("KERNEL_OK")
</pallas_src>

<mosaic_0001>
module attributes {stable_mosaic.version = 11 : i64} {
  func.func @mlp_kernel(%arg0: i32, %arg1: i32, %arg2: memref<1xi32, #tpu.memory_space<smem>>, %arg3: memref<64x128xbf16, #tpu.memory_space<vmem>>, %arg4: memref<128x128xbf16, #tpu.memory_space<vmem>>, %arg5: memref<1x128xf32, #tpu.memory_space<vmem>>, %arg6: memref<1x128xf32, #tpu.memory_space<vmem>>, %arg7: memref<64x128xf32, #tpu.memory_space<vmem>>, %arg8: memref<64x128xf32, #tpu.memory_space<vmem>>) attributes {dimension_semantics = [#tpu.dimension_semantics<parallel>, #tpu.dimension_semantics<arbitrary>], iteration_bounds = array<i64: 2, 2>, scalar_prefetch = 1 : i64, scratch_operands = 1 : i64, tpu.core_type = #tpu.core_type<tc>, window_params = [{transform_indices = @transform_0, window_bounds = array<i64: 64, 128>}, {transform_indices = @transform_1, window_bounds = array<i64: 128, 128>}, {transform_indices = @transform_2, window_bounds = array<i64: 1, 128>}, {transform_indices = @transform_3, window_bounds = array<i64: 1, 128>}, {transform_indices = @transform_4, window_bounds = array<i64: 64, 128>}]} {
    %c0_i32 = arith.constant 0 : i32
    %0 = arith.cmpi eq, %arg1, %c0_i32 : i32
    %1 = arith.extui %0 : i1 to i32
    %c0_i32_0 = arith.constant 0 : i32
    %2 = arith.cmpi ne, %1, %c0_i32_0 : i32
    scf.if %2 {
      %cst_9 = arith.constant 0.000000e+00 : f32
      %12 = vector.broadcast %cst_9 : f32 to vector<64x128xf32>
      %c0_10 = arith.constant 0 : index
      %c0_11 = arith.constant 0 : index
      %13 = vector.load %arg8[%c0_10, %c0_11] : memref<64x128xf32, #tpu.memory_space<vmem>>, vector<64x128xf32>
      tpu.vector_store %arg8[%c0_10, %c0_11], %12 {strides = array<i32>} : memref<64x128xf32, #tpu.memory_space<vmem>>, vector<64x128xf32>,
    } else {
    }
    %c0 = arith.constant 0 : index
    %c0_1 = arith.constant 0 : index
    %3 = vector.load %arg8[%c0, %c0_1] : memref<64x128xf32, #tpu.memory_space<vmem>>, vector<64x128xf32>
    %c0_2 = arith.constant 0 : index
    %c0_3 = arith.constant 0 : index
    %4 = vector.load %arg3[%c0_2, %c0_3] : memref<64x128xbf16, #tpu.memory_space<vmem>>, vector<64x128xbf16>
    %c0_4 = arith.constant 0 : index
    %c0_5 = arith.constant 0 : index
    %5 = vector.load %arg4[%c0_4, %c0_5] : memref<128x128xbf16, #tpu.memory_space<vmem>>, vector<128x128xbf16>
    %cst = arith.constant dense<0.000000e+00> : vector<64x128xf32>
    %6 = tpu.matmul %4, %5, %cst {dimension_numbers = #tpu.dot_dimension_numbers<[1], [0], [0], [1], [0, 0, 1, 1], [], []>} : vector<64x128xbf16>, vector<128x128xbf16>, vector<64x128xf32> -> vector<64x128xf32>
    %7 = arith.addf %3, %6 : vector<64x128xf32>
    %c0_6 = arith.constant 0 : index
    %c0_7 = arith.constant 0 : index
    %8 = vector.load %arg8[%c0_6, %c0_7] : memref<64x128xf32, #tpu.memory_space<vmem>>, vector<64x128xf32>
    tpu.vector_store %arg8[%c0_6, %c0_7], %7 {strides = array<i32>} : memref<64x128xf32, #tpu.memory_space<vmem>>, vector<64x128xf32>,
    %c1_i32 = arith.constant 1 : i32
    %9 = arith.cmpi eq, %arg1, %c1_i32 : i32
    %10 = arith.extui %9 : i1 to i32
    %c0_i32_8 = arith.constant 0 : i32
    %11 = arith.cmpi ne, %10, %c0_i32_8 : i32
    scf.if %11 {
      %c0_9 = arith.constant 0 : index
      %c0_10 = arith.constant 0 : index
      %12 = vector.load %arg8[%c0_9, %c0_10] : memref<64x128xf32, #tpu.memory_space<vmem>>, vector<64x128xf32>
      %cst_11 = arith.constant dense<0.000000e+00> : vector<128xf32>
      %13 = vector.multi_reduction <add>, %12, %cst_11 [0] : vector<64x128xf32> to vector<128xf32>
      %14 = vector.shape_cast %13 : vector<128xf32> to vector<1x128xf32>
      %cst_12 = arith.constant 6.400000e+01 : f32
      %15 = vector.broadcast %cst_12 : f32 to vector<1x128xf32>
      %16 = arith.divf %14, %15 : vector<1x128xf32>
      %17 = vector.broadcast %16 : vector<1x128xf32> to vector<64x128xf32>
      %18 = arith.subf %12, %17 : vector<64x128xf32>
      %19 = arith.mulf %18, %18 : vector<64x128xf32>
      %cst_13 = arith.constant dense<0.000000e+00> : vector<128xf32>
      %20 = vector.multi_reduction <add>, %19, %cst_13 [0] : vector<64x128xf32> to vector<128xf32>
      %21 = vector.shape_cast %20 : vector<128xf32> to vector<1x128xf32>
      %cst_14 = arith.constant 6.400000e+01 : f32
      %22 = vector.broadcast %cst_14 : f32 to vector<1x128xf32>
      %23 = arith.divf %21, %22 : vector<1x128xf32>
      %cst_15 = arith.constant 9.99999974E-6 : f32
      %24 = vector.broadcast %cst_15 : f32 to vector<1x128xf32>
      %25 = arith.addf %23, %24 : vector<1x128xf32>
      %26 = math.rsqrt %25 : vector<1x128xf32>
      %c0_16 = arith.constant 0 : index
      %c0_17 = arith.constant 0 : index
      %27 = vector.load %arg5[%c0_16, %c0_17] : memref<1x128xf32, #tpu.memory_space<vmem>>, vector<1x128xf32>
      %28 = arith.mulf %27, %26 : vector<1x128xf32>
      %c0_18 = arith.constant 0 : index
      %c0_19 = arith.constant 0 : index
      %29 = vector.load %arg6[%c0_18, %c0_19] : memref<1x128xf32, #tpu.memory_space<vmem>>, vector<1x128xf32>
      %30 = arith.mulf %16, %28 : vector<1x128xf32>
      %31 = arith.subf %29, %30 : vector<1x128xf32>
      %32 = vector.broadcast %28 : vector<1x128xf32> to vector<64x128xf32>
      %33 = arith.mulf %12, %32 : vector<64x128xf32>
      %34 = vector.broadcast %31 : vector<1x128xf32> to vector<64x128xf32>
      %35 = arith.addf %33, %34 : vector<64x128xf32>
      %cst_20 = arith.constant 0.000000e+00 : f32
      %36 = vector.broadcast %cst_20 : f32 to vector<64x128xf32>
      %37 = arith.maximumf %35, %36 : vector<64x128xf32>
      %c0_21 = arith.constant 0 : index
      %c0_22 = arith.constant 0 : index
      %38 = vector.load %arg7[%c0_21, %c0_22] : memref<64x128xf32, #tpu.memory_space<vmem>>, vector<64x128xf32>
      tpu.vector_store %arg7[%c0_21, %c0_22], %37 {strides = array<i32>} : memref<64x128xf32, #tpu.memory_space<vmem>>, vector<64x128xf32>,
    } else {
    }
    return
  }
  func.func @transform_0(%arg0: i32, %arg1: i32, %arg2: memref<1xi32, #tpu.memory_space<smem>>) -> (i32, i32) {
    %c0_i32 = arith.constant 0 : i32
    %c0_i32_0 = arith.constant 0 : i32
    return %c0_i32, %arg1 : i32, i32
  }
  func.func @transform_1(%arg0: i32, %arg1: i32, %arg2: memref<1xi32, #tpu.memory_space<smem>>) -> (i32, i32) {
    %c0_i32 = arith.constant 0 : i32
    return %arg1, %arg0 : i32, i32
  }
  func.func @transform_2(%arg0: i32, %arg1: i32, %arg2: memref<1xi32, #tpu.memory_space<smem>>) -> (i32, i32) {
    %c0_i32 = arith.constant 0 : i32
    %c0_i32_0 = arith.constant 0 : i32
    return %c0_i32, %arg0 : i32, i32
  }
  func.func @transform_3(%arg0: i32, %arg1: i32, %arg2: memref<1xi32, #tpu.memory_space<smem>>) -> (i32, i32) {
    %c0_i32 = arith.constant 0 : i32
    %c0_i32_0 = arith.constant 0 : i32
    return %c0_i32, %arg0 : i32, i32
  }
  func.func @transform_4(%arg0: i32, %arg1: i32, %arg2: memref<1xi32, #tpu.memory_space<smem>>) -> (i32, i32) {
    %c0_i32 = arith.constant 0 : i32
    %c0_i32_0 = arith.constant 0 : i32
    return %c0_i32, %arg0 : i32, i32
  }
}

</mosaic_0001>

<bundles_post_ra>
// kernel: tpu_custom_call.1
= control target key start
LH: loop header
LB: loop body
LE: loop exit
PB: predicated region body
PF: predicated region fallthrough
CT: control target
= control target key end

     0   :  { %s1589_s0 = inlined_call_operand.<no memory space> [shape: s32[1], index: 0, kind: input, shape index: {}]   ;;  %s1590_s1 = inlined_call_operand.hbm [shape: bf16[64,256], index: 1, kind: input, shape index: {}]   ;;  %s1591_s2 = inlined_call_operand.hbm [shape: bf16[256,256], index: 2, kind: input, shape index: {}]   ;;  %s1592_s3 = inlined_call_operand.vmem [shape: f32[1,256], index: 3, kind: input, shape index: {}]   ;;  %s1593_s4 = inlined_call_operand.vmem [shape: f32[1,256], index: 4, kind: input, shape index: {}]   ;;  %s1594_s5 = inlined_call_operand.hbm [shape: f32[64,256], index: 5, kind: output, shape index: {}]  }
   0x1   :  { %1604 = sst [smem:[#allocation22_spill]] %s1590_s1 }
   0x2   :  { %1605 = sst [smem:[#allocation23_spill]] %s1592_s3 }
   0x3   :  { %1606 = sst [smem:[#allocation24_spill]] %s1593_s4 }
   0x4   :  { %1607 = sst [smem:[#allocation25_spill]] %s1594_s5 }
   0x5   :  { %11 = vsyncpa [#allocation6], 0 }
   0x6   :  { %13 = vsyncpa [#allocation6 + $0x1], 0 }
   0x7   :  { %14 = vsyncpa [#allocation9], 0 }
   0x8   :  { %16 = vsyncpa [#allocation9 + $0x1], 0 }
   0x9   :  { %17 = vsyncpa [#allocation7], 0 }
   0xa   :  { %19 = vsyncpa [#allocation7 + $0x1], 0  ;;  %s1224_s0 = smov 0   ;;  %s1226_s18 = smov 0  }
   0xb   :  { %s1228_s19 = smov 0   ;;  %s1230_s20 = smov 0  }
   0xc   :  { %s1232_s21 = smov 0   ;;  %s1234_s22 = smov 0  }
   0xd   :  { %s1236_s23 = smov 0   ;;  %s1238_s24 = smov 0  }
   0xe   :  { %s1240_s25 = smov 0   ;;  %s1242_s26 = smov 0  }
   0xf   :  { %s1244_s27 = smov 0   ;;  %s1246_s28 = smov 0  }
  0x10   :  { %s1248_s29 = smov 0   ;;  %s1250_s30 = smov 0  }
  0x11 LB: > { %1608 = sst [smem:[#allocation14_spill]] %s1152_s22  ;;  %s726_s6 = sadd.s32 4294967295, %s1184_s30   ;;  %s1184_s30 = sphi %s1250_s30, %s25_s30   ;;  %s1180_s29 = sphi %s1248_s29, %s1657_s29   ;;  %s1176_s28 = sphi %s1246_s28, %s1656_s28   ;;  %s1172_s27 = sphi %s1244_s27, %s1655_s27   ;;  %s1168_s26 = sphi %s1242_s26, %s1654_s26   ;;  %s1164_s25 = sphi %s1240_s25, %s1644_s25   ;;  %s1160_s24 = sphi %s1238_s24, %s1653_s24   ;;  %s1156_s23 = sphi %s1236_s23, %s1652_s23   ;;  %s1152_s22 = sphi %s1234_s22, %s1642_s22   ;;  %s1148_s21 = sphi %s1232_s21, %s1651_s21   ;;  %s1144_s20 = sphi %s1230_s20, %s1650_s20   ;;  %s1140_s19 = sphi %s1228_s19, %s1649_s19   ;;  %s1136_s18 = sphi %s1226_s18, %s1648_s18   ;;  %s1132_s0 = sphi %s1224_s0, %s1647_s0  }
  0x12   : > { %1609 = sst [smem:[#allocation15_spill]] %s1164_s25  ;;  %s34_s7 = sadd.s32 1, %s1176_s28 }
  0x13   : > { %1610 = sst [smem:[#allocation16_spill]] %s1168_s26  ;;  %p1294_p0 = scmp.ge.s32.totalorder %s34_s7, 2 }
  0x14   : > { %s44_s9 = sadd.s32 1, %s1164_s25  ;;  %p51_p1 = scmp.ne.s32.totalorder %s1164_s25, %s1160_s24 }
  0x15   : > { %p52_p2 = scmp.eq.s32.totalorder %s1184_s30, 0  ;;  %s1659_s7 = smov (%p1294_p0, %s34_s7), 0 }
  0x16   : > { %1612 = sst [smem:[#allocation17_spill]] %s1659_s7  ;;  %p57_p4 = scmp.ne.s32.totalorder %s1160_s24, %s1156_s23 }
  0x17   : > { %p1308_p3 = por %p52_p2, %p51_p1  ;;  %s1315_s11 = ssub.s32 %s1176_s28, %s1659_s7 }
  0x18   : > { %p1317_p5 = scmp.eq.s32.totalorder %s726_s6, 0  ;;  %p42_p6 = scmp.eq.s32.totalorder %s1315_s11, 0 }
  0x19   : > { %p1322_p7 = scmp.eq.s32.totalorder %s726_s6, 3  ;;  %p1597_p9 = scmp.lt.s32.totalorder %s1184_s30, 4 }
  0x1a   : > { %p1328_p8 = por %p1317_p5, %p57_p4  ;;  %s187_s16 = sand.u32 1, %s1164_s25  }
  0x1b   : > { %s1333_s15 = scalar_select %p42_p6, %s1164_s25, %s44_s9  }
  0x1c   : > { %s730_s17 = sshll.u32 %s187_s16, 5  ;;  %s731_s23 = sshll.u32 %s1176_s28, 2 }
  0x1d   : > { %1617 = sst [smem:[#allocation18_spill]] %s1333_s15  ;;  %s191_s26 = scalar_lea.vmem [#allocation5], %s730_s17 }
  0x1e   : > { %s1618_s1 = sld [smem:[#allocation22_spill]]  ;;  %s198_s4 = sshll.u32 %s191_s26, 4  ;;  %s199_s4 = int_to_ptr.vmem [resolvable:$true] %s198_s4 }
  0x1f   : > { %p838_p10 = pnand %p1597_p9, %p1308_p3  ;;  %s188_s5 = scalar_lea.sflag [#allocation6], %s187_s16 }
  0x20   : > { %s1598_s7 = smov 128   ;;  %s1599_s9 = smov 64  }
  0x21   : > { %s1600_s17 = smov 4   ;;  %p736_p11 = scmp.ge.s32.totalorder %s1184_s30, 1 }
  0x22   : > { %p242_p12 = scmp.lt.s32.totalorder %s1184_s30, 5  ;;  %s727_s10 = sadd.s32 4294967294, %s1184_s30  }
  0x23   : > { %s37_s16 = sadd.s32 1, %s1180_s29  ;;  %p79_p1 = scmp.ne.s32.totalorder %s1152_s22, %s1148_s21 }
  0x24   : > { %s195_s6 = scalar_lea.hbm %s1618_s1, %s731_s23  ;;  %p1350_p13 = pnand %p736_p11, %p242_p12 }
  0x25   : > { %s196_s3 = sshll.u32 %s195_s6, 4  ;;  %s72_s23 = sadd.s32 1, %s1152_s22  ;;  %s197_s3 = int_to_ptr.hbm [resolvable:$true] %s196_s3 }
  0x26   : > { %840 = dma.hbm_to_vmem [thread:$0]  (!%p838_p10), %s197_s3, 512, %s199_s4, %s188_s5, %s1598_s7, %s1599_s9, %s1600_s17  }
  0x27   : > { %s1661_s16 = smov (!%p1294_p0, %s37_s16), %s1180_s29  ;;  %p85_p3 = scmp.ne.s32.totalorder %s1148_s21, %s1144_s20 }
  0x28   : > { %p39_p4 = scmp.ge.s32.totalorder %s1661_s16, 2  ;;  %s150_s3 = sadd.s32 1, %s1140_s19 }
  0x29   : > { %p1367_p6 = por %p79_p1, %p52_p2  ;;  %p1373_p10 = por %p85_p3, %p1317_p5 }
  0x2a   : > { %s1663_s16 = smov (%p39_p4, %s1661_s16), 0  ;;  %p160_p0 = scmp.ne.s32.totalorder %s1140_s19, %s1136_s18 }
  0x2b   : > { %1622 = sst [smem:[#allocation19_spill]] %s1663_s16  ;;  %p166_p11 = scmp.ne.s32.totalorder %s1136_s18, %s1132_s0 }
  0x2c   : > { %s68_s20 = ssub.s32 %s1180_s29, %s1663_s16  ;;  %p167_p12 = scmp.eq.s32.totalorder %s727_s10, 3 }
  0x2d   : > { %s69_s8 = sor.u32 %s68_s20, %s1315_s11  ;;  %p148_p2 = scmp.eq.s32.totalorder %s68_s20, 0 }
  0x2e   : > { %p70_p1 = scmp.eq.s32.totalorder %s69_s8, 0  ;;  %p1388_p9 = por %p1322_p7, %p160_p0 }
  0x2f   : > { %s1393_s5 = scalar_select %p148_p2, %s1140_s19, %s150_s3  }
  0x30   : > { %s1396_s7 = scalar_select %p70_p1, %s1152_s22, %s72_s23  }
  0x31   : > { %1624 = sst [smem:[#allocation20_spill]] %s1393_s5  ;;  %p1398_p5 = por %p167_p12, %p166_p11 }
  0x32   : > { %1625 = sst [smem:[#allocation21_spill]] %s1396_s7  ;;  %s208_s17 = sand.u32 1, %s1152_s22  }
  0x33   : > { %s732_s10 = sshll.u32 %s208_s17, 6  ;;  %s794_s11 = sshll.u32 %s1176_s28, 5 }
  0x34   : > { %s217_s1 = sadd.s32 %s1180_s29, %s794_s11  ;;  %s212_s16 = scalar_lea.vmem [#allocation8], %s732_s10 }
  0x35   : > { %s222_s20 = sshll.u32 %s212_s16, 4  ;;  %s735_s8 = sshll.u32 %s217_s1, 2  ;;  %s223_s20 = int_to_ptr.vmem [resolvable:$true] %s222_s20 }
  0x36   : > { %s219_s25 = scalar_lea.hbm %s1591_s2, %s735_s8  ;;  %p1627_p7 = scmp.lt.s32.totalorder %s1184_s30, 4 }
  0x37   : > { %s220_s23 = sshll.u32 %s219_s25, 4  ;;  %s209_s3 = scalar_lea.sflag [#allocation9], %s208_s17  ;;  %s221_s23 = int_to_ptr.hbm [resolvable:$true] %s220_s23 }
  0x38   : > { %p841_p3 = pnand %p1627_p7, %p1367_p6  ;;  %s1628_s7 = smov 4  }
  0x39   : > { %s1629_s5 = smov 64   ;;  %s1630_s22 = smov 128  }
  0x3a   : > { %843 = dma.hbm_to_vmem [thread:$0]  (!%p841_p3), %s221_s23, 1024, %s223_s20, %s209_s3, %s1630_s22, %s1629_s5, %s1628_s7  }
  0x3b   : > { %246 = sbr.rel (%p1350_p13) target bundleno = 395 (0x18b), region = 36  ;;  %s248_s1 = sand.u32 (!%p1350_p13), 1, %s1160_s24  }
  0x3c   : > { %s737_s16 = sshll.u32 (!%p1350_p13), %s248_s1, 5  ;;  %s249_s10 = scalar_lea.sflag (!%p1350_p13), [#allocation6], %s248_s1 }
  0x3d   : > { %s1418_s15 = scalar_lea.vmem (!%p1350_p13), [#allocation5], %s737_s16 }
  0x40   : > { %1119 = dma.done.wait (%p1328_p8), %s249_s10, 512  }
  0x41   : > { %1121 = vsyncadd (%p1328_p8), %s249_s10, 4294966784  ;;  %s258_s25 = sand.u32 1, %s1148_s21  }
  0x42   : > { %s738_s17 = sshll.u32 %s258_s25, 6  ;;  %s259_s22 = scalar_lea.sflag [#allocation9], %s258_s25 }
  0x43   : > { %s1425_s7 = scalar_lea.vmem [#allocation8], %s738_s17 }
  0x44   : > { %1123 = dma.done.wait (%p1373_p10), %s259_s22, 1024  }
  0x45   : > { %1125 = vsyncadd (%p1373_p10), %s259_s22, 4294966272  ;;  %s296_s26 = sand.u32 1, %s1136_s18   ;;  %p300_p13 = scmp.lt.s32.totalorder %s1172_s27, 1 }
  0x46   : > { %s739_s14 = sshll.u32 %s296_s26, 6  ;;  %s1631_s20 = sld [smem:[#allocation23_spill]] }
  0x47   : > { %s1436_s4 = scalar_select %p300_p13, %s1172_s27, 1 }
  0x48   : > { %s1632_s6 = sld [smem:[#allocation24_spill]]  ;;  %s1446_s1 = scalar_lea.vmem [#allocation10], %s739_s14 }
  0x49   : > { %s1633_s16 = sld [smem:[#allocation16_spill]] }
  0x4c   : > { %s302_s8 = scalar_lea.vmem %s1631_s20, %s1436_s4 }
  0x4e   : > { %s305_s3 = scalar_lea.vmem %s1632_s6, %s1436_s4 }
  0x4f   : > { %p740_p8 = scmp.ne.s32.totalorder %s1633_s16, 0 }
  0x51   : > { %309 = sbr.rel (%p740_p8) target bundleno = 95 (0x5f), region = 48 }
  0x56   : > { %v1189_v0 = vmov 0.0  }
  0x57   : > { %310 = vst [vmem:[#allocation2 + $0x30] sm:$0xff] %v1189_v0 }
  0x58   : > { %311 = vst [vmem:[#allocation2] sm:$0xff] %v1189_v0 }
  0x59   : > { %312 = vst [vmem:[#allocation2 + $0x18] sm:$0xff] %v1189_v0 }
  0x5a   : > { %313 = vst [vmem:[#allocation2 + $0x10] sm:$0xff] %v1189_v0 }
  0x5b   : > { %314 = vst [vmem:[#allocation2 + $0x8] sm:$0xff] %v1189_v0 }
  0x5c   : > { %315 = vst [vmem:[#allocation2 + $0x20] sm:$0xff] %v1189_v0 }
  0x5d   : > { %316 = vst [vmem:[#allocation2 + $0x28] sm:$0xff] %v1189_v0 }
  0x5e   : > { %317 = vst [vmem:[#allocation2 + $0x38] sm:$0xff] %v1189_v0 }
  0x5f PF: > { %v806_v1 = vld [vmem:[%s1425_s7 + $0x38] sm:$0xff]  ;;  %v805_v2 = vld [vmem:[%s1425_s7 + $0x30] sm:$0xff]  ;;  %v804_v3 = vld [vmem:[%s1425_s7 + $0x28] sm:$0xff]  ;;  %s1634_s10 = sld [smem:[#allocation16_spill]] }
  0x60   : > { %422 = vmatpush.bf16.msra.mxu0 %v806_v1  ;;  %807 = vmatpush.bf16.msra.mxu1 %v806_v1  ;;  %v803_v4 = vld [vmem:[%s1425_s7 + $0x20] sm:$0xff]  ;;  %v802_v5 = vld [vmem:[%s1425_s7 + $0x18] sm:$0xff]  ;;  %v801_v6 = vld [vmem:[%s1425_s7 + $0x10] sm:$0xff] }
  0x61   : > { %808 = vmatpush.bf16.msra.mxu2 %v806_v1  ;;  %809 = vmatpush.bf16.msra.mxu3 %v806_v1  ;;  %v800_v7 = vld [vmem:[%s1425_s7 + $0x8] sm:$0xff]  ;;  %v799_v8 = vld [vmem:[%s1425_s7] sm:$0xff]  ;;  %v797_v11 = vld [vmem:[%s1418_s15 + $0x10] sm:$0xff] }
  0x62   : > { %v795_v9 = vld [vmem:[%s1418_s15] sm:$0xff]  ;;  %v796_v10 = vld [vmem:[%s1418_s15 + $0x8] sm:$0xff]  ;;  %v798_v12 = vld [vmem:[%s1418_s15 + $0x18] sm:$0xff] }
  0x63   : > { %v318_v13 = vld [vmem:[#allocation2 + $0x30] sm:$0xff]  ;;  %v320_v14 = vld [vmem:[#allocation2 + $0x18] sm:$0xff]  ;;  %v322_v19 = vld [vmem:[#allocation2 + $0x8] sm:$0xff] }
  0x64   : > { %423 = vmatpush.bf16.msra.mxu0 %v805_v2  ;;  %810 = vmatpush.bf16.msra.mxu1 %v805_v2  ;;  %v324_v20 = vld [vmem:[#allocation2 + $0x28] sm:$0xff]  ;;  %v319_v21 = vld [vmem:[#allocation2] sm:$0xff]  ;;  %v321_v22 = vld [vmem:[#allocation2 + $0x10] sm:$0xff] }
  0x65   : > { %811 = vmatpush.bf16.msra.mxu2 %v805_v2  ;;  %812 = vmatpush.bf16.msra.mxu3 %v805_v2  ;;  %v323_v31 = vld [vmem:[#allocation2 + $0x20] sm:$0xff]  ;;  %v325_v32 = vld [vmem:[#allocation2 + $0x38] sm:$0xff]  ;;  %p789_p4 = scmp.ne.s32.totalorder %s1634_s10, 1 }
  0x68   : > { %424 = vmatpush.bf16.msra.mxu0 %v804_v3  ;;  %813 = vmatpush.bf16.msra.mxu1 %v804_v3 }
  0x69   : > { %814 = vmatpush.bf16.msra.mxu2 %v804_v3  ;;  %815 = vmatpush.bf16.msra.mxu3 %v804_v3 }
  0x6c   : > { %425 = vmatpush.bf16.msra.mxu0 %v803_v4  ;;  %816 = vmatpush.bf16.msra.mxu1 %v803_v4 }
  0x6d   : > { %817 = vmatpush.bf16.msra.mxu2 %v803_v4  ;;  %818 = vmatpush.bf16.msra.mxu3 %v803_v4 }
  0x70   : > { %426 = vmatpush.bf16.msra.mxu0 %v802_v5  ;;  %819 = vmatpush.bf16.msra.mxu1 %v802_v5 }
  0x71   : > { %820 = vmatpush.bf16.msra.mxu2 %v802_v5  ;;  %821 = vmatpush.bf16.msra.mxu3 %v802_v5 }
  0x74   : > { %427 = vmatpush.bf16.msra.mxu0 %v801_v6  ;;  %822 = vmatpush.bf16.msra.mxu1 %v801_v6 }
  0x75   : > { %823 = vmatpush.bf16.msra.mxu2 %v801_v6  ;;  %824 = vmatpush.bf16.msra.mxu3 %v801_v6 }
  0x78   : > { %428 = vmatpush.bf16.msra.mxu0 %v800_v7  ;;  %825 = vmatpush.bf16.msra.mxu1 %v800_v7 }
  0x79   : > { %826 = vmatpush.bf16.msra.mxu2 %v800_v7  ;;  %827 = vmatpush.bf16.msra.mxu3 %v800_v7 }
  0x7c   : > { %429 = vmatpush.bf16.msra.mxu0 %v799_v8  ;;  %828 = vmatpush.bf16.msra.mxu1 %v799_v8 }
  0x7d   : > { %829 = vmatpush.bf16.msra.mxu2 %v799_v8  ;;  %830 = vmatpush.bf16.msra.mxu3 %v799_v8 }
  0x7f   : > { %430 = vmatmul.bf16.vlgmr.msra.gmra.mxu0 %v795_v9  ;;  %435 = vmatmul.bf16.vlgmr.msra.gmra.mxu1 %v796_v10 }
  0x80   : > { %440 = vmatmul.bf16.vlgmr.msra.gmra.mxu2 %v797_v11  ;;  %445 = vmatmul.bf16.vlgmr.msra.gmra.mxu3 %v798_v12 }
  0xfc   : > { %v431_v15 = vpop.f32.mrf.mxu0  ;;  %v436_v16 = vpop.f32.mrf.mxu1 }
  0xfd   : > { %v451_v17 = vadd.f32 %v431_v15, %v318_v13  ;;  %v453_v18 = vadd.f32 %v436_v16, %v320_v14 }
  0xff   : > { %459 = vst [vmem:[#allocation2 + $0x30] sm:$0xff] %v451_v17 }
 0x100   : > { %461 = vst [vmem:[#allocation2 + $0x18] sm:$0xff] %v453_v18 }
 0x103   : > { %v441_v23 = vpop.f32.mrf.mxu2  ;;  %v446_v24 = vpop.f32.mrf.mxu3 }
 0x104   : > { %v455_v25 = vadd.f32 %v441_v23, %v322_v19  ;;  %v457_v26 = vadd.f32 %v446_v24, %v324_v20  ;;  %v433_v27 = vpop.f32.mrf.mxu0  ;;  %v438_v28 = vpop.f32.mrf.mxu1 }
 0x105   : > { %v452_v29 = vadd.f32 %v433_v27, %v319_v21  ;;  %v454_v30 = vadd.f32 %v438_v28, %v321_v22 }
 0x106   : > { %463 = vst [vmem:[#allocation2 + $0x8] sm:$0xff] %v455_v25 }
 0x107   : > { %465 = vst [vmem:[#allocation2 + $0x28] sm:$0xff] %v457_v26 }
 0x108   : > { %460 = vst [vmem:[#allocation2] sm:$0xff] %v452_v29 }
 0x109   : > { %462 = vst [vmem:[#allocation2 + $0x10] sm:$0xff] %v454_v30 }
 0x10b   : > { %v443_v33 = vpop.f32.mrf.mxu2  ;;  %v448_v34 = vpop.f32.mrf.mxu3  ;;  %470 = sbr.rel (%p789_p4) target bundleno = 373 (0x175), region = 52 }
 0x10c   : > { %v456_v35 = vadd.f32 %v443_v33, %v323_v31  ;;  %v458_v36 = vadd.f32 %v448_v34, %v325_v32 }
 0x10e   : > { %464 = vst [vmem:[#allocation2 + $0x20] sm:$0xff] %v456_v35 }
 0x10f   : > { %466 = vst [vmem:[#allocation2 + $0x38] sm:$0xff] %v458_v36 }
 0x110   : > { %v1462_v37 = vld [vmem:[#allocation2 + $0x30] sm:$0xff]  ;;  %v1464_v38 = vld [vmem:[#allocation2] sm:$0xff]  ;;  %v1466_v39 = vld [vmem:[#allocation2 + $0x18] sm:$0xff]  ;;  %v1190_v41 = vmov 64.0  }
 0x111   : > { %v479_v40 = vadd.f32 %v1464_v38, %v1462_v37  ;;  %970 = vrcp.f32 %v1190_v41  ;;  %v1470_v42 = vld [vmem:[#allocation2 + $0x10] sm:$0xff]  ;;  %v1473_v44 = vld [vmem:[#allocation2 + $0x8] sm:$0xff] }
 0x112   : > { %v1479_v49 = vld [vmem:[#allocation2 + $0x28] sm:$0xff] }
 0x113   : > { %v480_v43 = vadd.f32 %v479_v40, %v1466_v39 }
 0x115   : > { %v481_v45 = vadd.f32 %v480_v43, %v1470_v42  ;;  %v1476_v46 = vld [vmem:[#allocation2 + $0x20] sm:$0xff] }
 0x116   : > { %v1482_v52 = vld [vmem:[#allocation2 + $0x38] sm:$0xff]  ;;  %v541_v43 = vld [vmem:[%s302_s8] sm:$0x1] }
 0x117   : > { %v971_v47 = vpop.eup %970  ;;  %v482_v48 = vadd.f32 %v481_v45, %v1473_v44 }
 0x118   : > { %v493_v50 = vmul.f32 64.0, %v971_v47  ;;  %vm497_vm0 = vweird.f32 %v971_v47 }
 0x119   : > { %v483_v51 = vadd.f32 %v482_v48, %v1476_v46  ;;  %v543_v48 = vld [vmem:[%s305_s3] sm:$0x1] }
 0x11a   : > { %v494_v54 = vsub.f32 1.0, %v493_v50 }
 0x11b   : > { %v484_v53 = vadd.f32 %v483_v51, %v1479_v49 }
 0x11c   : > { %v495_v57 = vmul.f32 %v971_v47, %v494_v54 }
 0x11d   : > { %v485_v55 = vadd.f32 %v484_v53, %v1482_v52 }
 0x11e   : > { %v496_v60 = vadd.f32 %v971_v47, %v495_v57 }
 0x11f   : > { %v486_v56 = vrot.slane %v485_v55, 4 }
 0x120   : > { %v498_v63 = vsel %vm497_vm0, %v971_v47, %v496_v60 }
 0x121   : > { %v487_v58 = vadd.f32 %v486_v56, %v485_v55 }
 0x123   : > { %v488_v59 = vrot.slane %v487_v58, 2 }
 0x125   : > { %v489_v61 = vadd.f32 %v488_v59, %v487_v58 }
 0x127   : > { %v490_v62 = vrot.slane %v489_v61, 1 }
 0x129   : > { %v491_v0 = vadd.f32 %v490_v62, %v489_v61 }
 0x12b   : > { %v499_v1 = vmul.f32 %v498_v63, %v491_v0 }
 0x12d   : > { %v500_v2 = vsub.f32 %v1462_v37, %v499_v1  ;;  %v501_v3 = vsub.f32 %v1464_v38, %v499_v1  ;;  %v502_v4 = vsub.f32 %v1466_v39, %v499_v1  ;;  %v503_v5 = vsub.f32 %v1470_v42, %v499_v1 }
 0x12e   : > { %v504_v6 = vsub.f32 %v1473_v44, %v499_v1  ;;  %v505_v10 = vsub.f32 %v1476_v46, %v499_v1  ;;  %v506_v13 = vsub.f32 %v1479_v49, %v499_v1  ;;  %v507_v16 = vsub.f32 %v1482_v52, %v499_v1 }
 0x12f   : > { %v508_v7 = vmul.f32 %v500_v2, %v500_v2  ;;  %v509_v8 = vmul.f32 %v501_v3, %v501_v3  ;;  %v510_v9 = vmul.f32 %v502_v4, %v502_v4  ;;  %v511_v11 = vmul.f32 %v503_v5, %v503_v5 }
 0x130   : > { %v512_v14 = vmul.f32 %v504_v6, %v504_v6  ;;  %v513_v17 = vmul.f32 %v505_v10, %v505_v10  ;;  %v514_v19 = vmul.f32 %v506_v13, %v506_v13  ;;  %v515_v21 = vmul.f32 %v507_v16, %v507_v16 }
 0x131   : > { %v516_v12 = vadd.f32 %v509_v8, %v508_v7 }
 0x133   : > { %v517_v15 = vadd.f32 %v516_v12, %v510_v9 }
 0x135   : > { %v518_v18 = vadd.f32 %v517_v15, %v511_v11 }
 0x137   : > { %v519_v20 = vadd.f32 %v518_v18, %v512_v14 }
 0x139   : > { %v520_v22 = vadd.f32 %v519_v20, %v513_v17 }
 0x13b   : > { %v521_v23 = vadd.f32 %v520_v22, %v514_v19 }
 0x13d   : > { %v522_v24 = vadd.f32 %v521_v23, %v515_v21 }
 0x13f   : > { %v523_v25 = vrot.slane %v522_v24, 4 }
 0x141   : > { %v524_v26 = vadd.f32 %v523_v25, %v522_v24 }
 0x143   : > { %v525_v27 = vrot.slane %v524_v26, 2 }
 0x145   : > { %v526_v28 = vadd.f32 %v525_v27, %v524_v26 }
 0x147   : > { %v527_v29 = vrot.slane %v526_v28, 1 }
 0x149   : > { %v528_v30 = vadd.f32 %v527_v29, %v526_v28 }
 0x14b   : > { %v529_v31 = vmul.f32 %v528_v30, %v498_v63 }
 0x14d   : > { %v530_v32 = vadd.f32 1e-05, %v529_v31 }
 0x14f   : > { %972 = vrsqrt.f32 %v530_v32  ;;  %vm537_vm1 = vweird.f32 %v530_v32 }
 0x155   : > { %v973_v33 = vpop.eup %972 }
 0x156   : > { %v532_v34 = vmul.f32 %v973_v33, %v530_v32  ;;  %vm538_vm2 = vweird.f32 %v973_v33 }
 0x157   : > { %vm539_vm3 = vmor %vm537_vm1, %vm538_vm2 }
 0x158   : > { %v533_v35 = vmul.f32 %v973_v33, %v532_v34 }
 0x15a   : > { %v534_v36 = vmul.f32 0.5, %v533_v35 }
 0x15c   : > { %v535_v40 = vsub.f32 1.5, %v534_v36 }
 0x15e   : > { %v536_v41 = vmul.f32 %v973_v33, %v535_v40 }
 0x160   : > { %v540_v45 = vsel %vm539_vm3, %v973_v33, %v536_v41 }
 0x161   : > { %v542_v47 = vmul.f32 %v541_v43, %v540_v45 }
 0x163   : > { %v544_v50 = vmul.f32 %v542_v47, %v499_v1  ;;  %v547_v51 = vperm.slane %v542_v47, 0 }
 0x165   : > { %v545_v53 = vsub.f32 %v543_v48, %v544_v50  ;;  %v549_v54 = vmul.f32 %v547_v51, %v1462_v37  ;;  %v550_v55 = vmul.f32 %v547_v51, %v1464_v38  ;;  %v551_v56 = vmul.f32 %v547_v51, %v1466_v39 }
 0x166   : > { %v552_v57 = vmul.f32 %v547_v51, %v1470_v42  ;;  %v553_v58 = vmul.f32 %v547_v51, %v1473_v44  ;;  %v554_v59 = vmul.f32 %v547_v51, %v1476_v46  ;;  %v555_v61 = vmul.f32 %v547_v51, %v1479_v49 }
 0x167   : > { %v558_v60 = vperm.slane %v545_v53, 0  ;;  %v556_v62 = vmul.f32 %v547_v51, %v1482_v52 }
 0x169   : > { %v560_v63 = vadd.f32 %v558_v60, %v549_v54  ;;  %v561_v37 = vadd.f32 %v558_v60, %v550_v55  ;;  %v562_v0 = vadd.f32 %v558_v60, %v551_v56  ;;  %v563_v38 = vadd.f32 %v558_v60, %v552_v57 }
 0x16a   : > { %v564_v39 = vadd.f32 %v558_v60, %v553_v58  ;;  %v565_v42 = vadd.f32 %v558_v60, %v554_v59  ;;  %v566_v2 = vadd.f32 %v558_v60, %v555_v61  ;;  %v567_v3 = vadd.f32 %v558_v60, %v556_v62 }
 0x16b   : > { %v568_v44 = vmax.f32 %v560_v63, 0.0  ;;  %v569_v46 = vmax.f32 %v561_v37, 0.0  ;;  %v570_v1 = vmax.f32 %v562_v0, 0.0  ;;  %v571_v49 = vmax.f32 %v563_v38, 0.0 }
 0x16c   : > { %v572_v52 = vmax.f32 %v564_v39, 0.0  ;;  %v573_v4 = vmax.f32 %v565_v42, 0.0  ;;  %v574_v5 = vmax.f32 %v566_v2, 0.0  ;;  %v575_v6 = vmax.f32 %v567_v3, 0.0 }
 0x16d   : > { %576 = vst [vmem:[%s1446_s1] sm:$0xff] %v568_v44 }
 0x16e   : > { %577 = vst [vmem:[%s1446_s1 + $0x8] sm:$0xff] %v569_v46 }
 0x16f   : > { %578 = vst [vmem:[%s1446_s1 + $0x10] sm:$0xff] %v570_v1 }
 0x170   : > { %579 = vst [vmem:[%s1446_s1 + $0x18] sm:$0xff] %v571_v49 }
 0x171   : > { %580 = vst [vmem:[%s1446_s1 + $0x20] sm:$0xff] %v572_v52 }
 0x172   : > { %581 = vst [vmem:[%s1446_s1 + $0x28] sm:$0xff] %v573_v4 }
 0x173   : > { %582 = vst [vmem:[%s1446_s1 + $0x30] sm:$0xff] %v574_v5 }
 0x174   : > { %583 = vst [vmem:[%s1446_s1 + $0x38] sm:$0xff] %v575_v6 }
 0x175 PF: > { %s791_s4 = sshll.u32 %s1172_s27, 3  ;;  %s1637_s20 = sld [smem:[#allocation25_spill]] }
 0x176   : > { %s596_s23 = sshll.u32 %s1446_s1, 4  ;;  %s585_s3 = scalar_lea.sflag [#allocation7], %s296_s26  ;;  %s597_s23 = int_to_ptr.vmem [resolvable:$true] %s596_s23 }
 0x17b   : > { %s1638_s8 = smov %s1637_s20  ;;  %s595_s13 = scalar_lea.hbm %s1637_s20, %s791_s4 }
 0x17c   : > { %s598_s6 = sshll.u32 %s595_s13, 4  ;;  %s1054_s27 = scalar_lea.hbm %s1638_s8, 128  ;;  %s599_s6 = int_to_ptr.hbm [resolvable:$true] %s598_s6 }
 0x17d   : > { %s1048_s16 = sshra.s32 %s599_s6, 4  ;;  %s1049_s16 = int_to_ptr.hbm [resolvable:$true] %s1048_s16 }
 0x17e   : > { %s1050_s10 = scalar_lea.hbm %s1049_s16, 64  ;;  %p1055_p11 = scmp.lt.s32.totalorder %s1049_s16, %s1638_s8 }
 0x17f   : > { %p1051_p6 = scmp.ne.s32.totalorder %s1049_s16, %s1050_s10  ;;  %p1056_p12 = scmp.lt.s32.totalorder %s1054_s27, %s1050_s10 }
 0x181   : > { %p1052_p10 = pnand %p1051_p6, %p1388_p9  ;;  %p1057_p2 = por %p1056_p12, %p1055_p11 }
 0x183   : > { %p1053_p0 = pneg %p1052_p10 }
 0x185   : > { %p1058_p1 = pnand %p1057_p2, %p1053_p0 }
 0x187   : > { %1061 = shalt.err (!%p1058_p1)
}
 0x188   : > { %s1191_s26 = smov 128   ;;  %s1192_s1 = smov 256  }
 0x189   : > { %s1193_s7 = smov 8  }
 0x18a   : > { %835 = dma.vmem_to_hbm [thread:$0]  (%p1388_p9), %s597_s23, 1024, %s599_s6, %s585_s3, %s1191_s26, %s1192_s1, %s1193_s7  }
 0x18b PF: > { %p849_p7 = scmp.ge.s32.totalorder %s1184_s30, 2  ;;  %s613_s14 = sand.u32 1, %s1132_s0  }
 0x18c   : > { %s614_s4 = scalar_lea.sflag [#allocation7], %s613_s14 }
 0x18d   : > { %p845_p3 = pnand %p849_p7, %p1398_p5 }
 0x18f   : > { %p846_p13 = pneg %p845_p3 }
 0x191   : > { %1127 = dma.done.wait (%p846_p13), %s614_s4, 1024  }
 0x192   : > { %1129 = vsyncadd (%p846_p13), %s614_s4, 4294966272  ;;  %s25_s30 = sadd.s32 1, %s1184_s30   ;;  %s1640_s12 = sld [smem:[#allocation20_spill]] }
 0x193   : > { %p1542_p8 = scmp.ge.s32.totalorder %s25_s30, 6   ;;  %s1641_s11 = sld [smem:[#allocation14_spill]] }
 0x194   : > { %s1642_s22 = sld [smem:[#allocation21_spill]]  ;;  %s1647_s0 = smov %s1136_s18 }
 0x195   : > { %s1643_s13 = sld [smem:[#allocation15_spill]]  ;;  %s1648_s18 = smov %s1140_s19 }
 0x196   : > { %s1644_s25 = sld [smem:[#allocation18_spill]]  ;;  %s1650_s20 = smov %s1148_s21 }
 0x197   : > { %s1645_s9 = sld [smem:[#allocation17_spill]]  ;;  %s1652_s23 = smov %s1160_s24 }
 0x198   : > { %s1646_s6 = sld [smem:[#allocation19_spill]]  ;;  %s1649_s19 = smov %s1640_s12 }
 0x199   : > { %s1651_s21 = smov %s1641_s11  ;;  %s1654_s26 = smov %s1176_s28 }
 0x19a   : > { %s1655_s27 = smov %s1180_s29  ;;  %24 = sbr.rel (!%p1542_p8) target bundleno = 17 (0x11), region = 108 }
 0x19b   : > { %s1653_s24 = smov %s1643_s13 }
 0x19d   : > { %s1656_s28 = smov %s1645_s9 }
 0x19e   : > { %s1657_s29 = smov %s1646_s6 }
 0x19f   :  { %620 = vsyncpa [#allocation6], 1 }
 0x1a0   :  { %622 = vsyncpa [#allocation6 + $0x1], 1 }
 0x1a1   :  { %623 = vsyncpa [#allocation9], 1 }
 0x1a2   :  { %625 = vsyncpa [#allocation9 + $0x1], 1 }
 0x1a3   :  { %626 = vsyncpa [#allocation7], 1 }
 0x1a4   :  { %628 = vsyncpa [#allocation7 + $0x1], 1 }

</bundles_post_ra>
